<compile_context>
chip_gen: v6e
topology: v6e:2x2x1
jax: 0.10.0
libtpu: 0.0.40
codegen_flags: <defaults>
</compile_context>

<pallas_src>
import functools

import jax
import jax.numpy as jnp
from jax.experimental import pallas as pl
from jax.experimental.pallas import tpu as pltpu

_LANE = 128
_DEFAULT_VMEM_CAP = 64 * 1024 * 1024          # conservative default (v7x physical VMEM)
_INTERNAL_SCRATCH = 4 * 1024 * 1024           # headroom for compiler internal scratch
_BUFFER1_MIN_WEIGHT_BYTES = 2 * 1024 * 1024   # single-buffer weights only when it matters


def _round_up(x, m):
    return (x + m - 1) // m * m


def _vmem_capacity_bytes():
    try:
        cap = getattr(pltpu.get_tpu_info(), "vmem_capacity_bytes", None)
        if cap:
            return int(cap)
    except Exception:
        pass
    return _DEFAULT_VMEM_CAP


@functools.lru_cache(maxsize=1)
def _vmem_limit_bytes():
    # ~85% of physical: ~54 MiB on v7x (64 MiB), ~108 MiB on v5e/v6e (128 MiB).
    return int(_vmem_capacity_bytes() * 0.85)


@functools.lru_cache(maxsize=1)
def _buffered_ok():
    # Capability check (construction only): does this build accept pipeline_mode?
    if not hasattr(pl, "Buffered"):
        return False
    try:
        pl.BlockSpec((8, 128), lambda i: (0, 0), pipeline_mode=pl.Buffered(1))
        return True
    except Exception:
        return False


def _sublane(*dtypes):
    # second-to-last-dim granularity: 8 for 4-byte, 16 for 2-byte, 32 for 1-byte
    return max(32 // jnp.dtype(d).itemsize for d in dtypes)


# ---------------------------------------------------------------------------
# Kernels
# ---------------------------------------------------------------------------
def _cast(v, dtype):
    return v if v.dtype == dtype else v.astype(dtype)


def _mlp_kernel(x_ref, w1_ref, b1_ref, w2_ref, b2_ref, o_ref):
    # hidden = relu(x @ W1 + b1); out = hidden @ W2 + b2.  f32 accumulation on MXU,
    # bias/ReLU in f32 on the VPU, in-kernel cast of activations if weights are bf16.
    x = _cast(x_ref[...], w1_ref.dtype)
    h = jnp.dot(x, w1_ref[...], preferred_element_type=jnp.float32)
    h = jnp.maximum(h + b1_ref[...].astype(jnp.float32), 0.0)
    o = jnp.dot(_cast(h, w2_ref.dtype), w2_ref[...],
                preferred_element_type=jnp.float32)
    o_ref[...] = (o + b2_ref[...].astype(jnp.float32)).astype(o_ref.dtype)


def _linear_kernel(x_ref, w_ref, b_ref, o_ref):
    x = _cast(x_ref[...], w_ref.dtype)
    o = jnp.dot(x, w_ref[...], preferred_element_type=jnp.float32)
    o_ref[...] = (o + b_ref[...].astype(jnp.float32)).astype(o_ref.dtype)


def _mlp_ktiled_kernel(x_ref, w1_ref, b1_ref, w2_ref, b2_ref, o_ref, h_acc):
    # K-tiled first matmul with f32 accumulator; bias/ReLU/second matmul at last k.
    k = pl.program_id(1)

    @pl.when(k == 0)
    def _():
        h_acc[...] = jnp.zeros_like(h_acc)

    x = _cast(x_ref[...], w1_ref.dtype)
    h_acc[...] += jnp.dot(x, w1_ref[...], preferred_element_type=jnp.float32)

    @pl.when(k == pl.num_programs(1) - 1)
    def _():
        h = jnp.maximum(h_acc[...] + b1_ref[...].astype(jnp.float32), 0.0)
        o = jnp.dot(_cast(h, w2_ref.dtype), w2_ref[...],
                    preferred_element_type=jnp.float32)
        o_ref[...] = (o + b2_ref[...].astype(jnp.float32)).astype(o_ref.dtype)


def _linear_ktiled_kernel(x_ref, w_ref, b_ref, o_ref, acc):
    k = pl.program_id(1)

    @pl.when(k == 0)
    def _():
        acc[...] = jnp.zeros_like(acc)

    x = _cast(x_ref[...], w_ref.dtype)
    acc[...] += jnp.dot(x, w_ref[...], preferred_element_type=jnp.float32)

    @pl.when(k == pl.num_programs(1) - 1)
    def _():
        o_ref[...] = (acc[...] + b_ref[...].astype(jnp.float32)).astype(o_ref.dtype)


# ---------------------------------------------------------------------------
# One-time parameter preparation (hoisted out of the per-call path)
# ---------------------------------------------------------------------------
def prepare_params(params, mlp=True, compute_dtype=None, k_tile=None):
    """Convert PyTorch-layout (out,in) weights / (out,) biases into pre-transposed,
    lane-dense kernel parameters.  Call once; reuse for every forward.

    k_tile: None -> decide automatically (K tiling only when monolithic weights would
                    not comfortably fit the VMEM budget);
            0    -> force the monolithic (no K tiling) layout;
            n    -> force K tiling with tile n (rounded up to a multiple of 128).
    """
    if mlp:
        w1, b1, w2, b2 = params
        F, H, C = int(w1.shape[1]), int(w1.shape[0]), int(w2.shape[0])
        dtype = w1.dtype if compute_dtype is None else compute_dtype
        item = jnp.dtype(dtype).itemsize
        Hp, Cp = _round_up(H, _LANE), _round_up(C, _LANE)
        resident = (F * Hp + Hp * Cp + Hp + Cp) * item
    else:
        w, b = params
        F, C = int(w.shape[1]), int(w.shape[0])
        dtype = w.dtype if compute_dtype is None else compute_dtype
        item = jnp.dtype(dtype).itemsize
        Hp, Cp = 0, _round_up(C, _LANE)
        resident = (F * Cp + Cp) * item

    if k_tile is None:
        wfac = 1 if (_buffered_ok() and resident >= _BUFFER1_MIN_WEIGHT_BYTES) else 2
        k_tile = 512 if resident * wfac > 0.4 * _vmem_limit_bytes() else 0
    k_tile = _round_up(int(k_tile), _LANE) if k_tile else 0
    Kp = _round_up(F, k_tile) if k_tile else F   # K is left UNPADDED in monolithic mode

    if mlp:
        w1_t = jnp.zeros((Kp, Hp), dtype).at[:F, :H].set(jnp.transpose(w1).astype(dtype))
        b1_p = jnp.zeros((1, Hp), b1.dtype).at[0, :H].set(b1)
        w2_t = jnp.zeros((Hp, Cp), dtype).at[:H, :C].set(jnp.transpose(w2).astype(dtype))
        b2_p = jnp.zeros((1, Cp), b2.dtype).at[0, :C].set(b2)
        tensors = (w1_t, b1_p, w2_t, b2_p)
    else:
        w_t = jnp.zeros((Kp, Cp), dtype).at[:F, :C].set(jnp.transpose(w).astype(dtype))
        b_p = jnp.zeros((1, Cp), b.dtype).at[0, :C].set(b)
        tensors = (w_t, b_p)

    return dict(mlp=bool(mlp), n_features=F, n_classes=C,
                k_tile=int(k_tile), k_padded=int(Kp), tensors=tensors)


def _choose_block_b(batch, bytes_per_row, budget_bytes, sublane):
    b_pad = _round_up(batch, sublane)
    if b_pad <= sublane:
        return sublane
    max_by_vmem = max(sublane,
                      budget_bytes // max(bytes_per_row, 1) // sublane * sublane)
    # >=4 grid steps (2 per v7x TensorCore) when blocks can stay >=256 rows,
    # otherwise >=2 steps; cap at 2048 rows so huge batches still pipeline well.
    steps = 4 if b_pad >= 4 * 256 else 2
    blk = _round_up(pl.cdiv(b_pad, steps), sublane)
    return max(min(blk, 2048, max_by_vmem), sublane)


# ---------------------------------------------------------------------------
# Forward
# ---------------------------------------------------------------------------
def fine_tuner_forward(x, prepared, block_b=None):
    """x: (B, n_features).  `prepared` comes from prepare_params()."""
    mlp = prepared["mlp"]
    F, C = prepared["n_features"], prepared["n_classes"]
    k_tile, Kp = prepared["k_tile"], prepared["k_padded"]
    tensors = prepared["tensors"]
    out_dtype = x.dtype

    if mlp:
        w1_t, b1_p, w2_t, b2_p = tensors
        Hp, Cp = w2_t.shape
        w_dtype = w1_t.dtype
    else:
        w_t, b_p = tensors
        Hp, Cp = 0, w_t.shape[1]
        w_dtype = w_t.dtype

    x_item = jnp.dtype(x.dtype).itemsize
    w_item = jnp.dtype(w_dtype).itemsize
    o_item = jnp.dtype(out_dtype).itemsize
    B = x.shape[0]

    # ---- VMEM budget bookkeeping ----------------------------------------
    vmem_limit = _vmem_limit_bytes()
    resident_w = sum(int(t.size) * jnp.dtype(t.dtype).itemsize for t in tensors)
    use_buf1 = _buffered_ok() and resident_w >= _BUFFER1_MIN_WEIGHT_BYTES
    wfac = 1 if use_buf1 else 2
    if k_tile:
        w1_cols = Hp if mlp else Cp
        weight_bytes = ((resident_w - Kp * w1_cols * w_item) * wfac
                        + 2 * k_tile * w1_cols * w_item)      # k-varying tile: 2 buffers
    else:
        weight_bytes = resident_w * wfac

    k_cols = k_tile if k_tile else F
    bytes_per_row = 2 * k_cols * x_item                        # x tile (double buffered)
    if x.dtype != w_dtype:
        bytes_per_row += k_cols * w_item                       # in-kernel cast copy of x
    if mlp:
        bytes_per_row += Hp * 4                                # f32 hidden / accumulator
        if w_dtype != jnp.float32:
            bytes_per_row += Hp * w_item                       # cast of hidden for 2nd dot
    bytes_per_row += 2 * Cp * o_item + Cp * 4                  # out tile + f32 result
    budget = max(vmem_limit - _INTERNAL_SCRATCH - weight_bytes, 1 << 20)

    sublane = _sublane(x.dtype, out_dtype)
    if block_b is None:
        block_b = _choose_block_b(B, bytes_per_row, budget, sublane)
    block_b = max(sublane, _round_up(int(block_b), sublane))

    # ---- batch (and, only in K-tiled mode, feature) padding -------------
    B_pad = _round_up(B, block_b)
    pad_b = B_pad - B
    pad_f = (Kp - F) if k_tile else 0
    if pad_b or pad_f:
        x = jnp.pad(x, ((0, pad_b), (0, pad_f)))
    n_b = B_pad // block_b

    # ---- specs -----------------------------------------------------------
    if k_tile:
        grid = (n_b, Kp // k_tile)
        sems = ("parallel", "arbitrary")
        const_idx = lambda i, k: (0, 0)
        x_spec = pl.BlockSpec((block_b, k_tile), lambda i, k: (i, k))
        o_spec = pl.BlockSpec((block_b, Cp), lambda i, k: (i, 0))
    else:
        grid = (n_b,)
        sems = ("parallel",)
        const_idx = lambda i: (0, 0)
        x_spec = pl.BlockSpec((block_b, F), lambda i: (i, 0))   # full-extent last dim
        o_spec = pl.BlockSpec((block_b, Cp), lambda i: (i, 0))

    if use_buf1:
        def wspec(shape):   # grid-invariant operand: single buffered
            return pl.BlockSpec(shape, const_idx, pipeline_mode=pl.Buffered(1))
    else:
        def wspec(shape):
            return pl.BlockSpec(shape, const_idx)

    scratch = []
    if k_tile:
        if mlp:
            kernel = _mlp_ktiled_kernel
            in_specs = [x_spec,
                        pl.BlockSpec((k_tile, Hp), lambda i, k: (k, 0)),
                        wspec((1, Hp)), wspec((Hp, Cp)), wspec((1, Cp))]
            args = (x, w1_t, b1_p, w2_t, b2_p)
            scratch = [pltpu.VMEM((block_b, Hp), jnp.float32)]
        else:
            kernel = _linear_ktiled_kernel
            in_specs = [x_spec,
                        pl.BlockSpec((k_tile, Cp), lambda i, k: (k, 0)),
                        wspec((1, Cp))]
            args = (x, w_t, b_p)
            scratch = [pltpu.VMEM((block_b, Cp), jnp.float32)]
    else:
        if mlp:
            kernel = _mlp_kernel
            in_specs = [x_spec, wspec((F, Hp)), wspec((1, Hp)),
                        wspec((Hp, Cp)), wspec((1, Cp))]
            args = (x, w1_t, b1_p, w2_t, b2_p)
        else:
            kernel = _linear_kernel
            in_specs = [x_spec, wspec((F, Cp)), wspec((1, Cp))]
            args = (x, w_t, b_p)

    out = pl.pallas_call(
        kernel,
        out_shape=jax.ShapeDtypeStruct((B_pad, Cp), out_dtype),
        grid_spec=pltpu.PrefetchScalarGridSpec(
            num_scalar_prefetch=0,
            grid=grid,
            in_specs=in_specs,
            out_specs=o_spec,
            scratch_shapes=scratch,
        ),
        compiler_params=pltpu.CompilerParams(
            dimension_semantics=sems,
            vmem_limit_bytes=vmem_limit,
        ),
    )(*args)

    if B_pad != B or Cp != C:          # slice only if padding actually happened
        out = out[:B, :C]
    return out


def _init_linear(key, out_f, in_f):
    """Deterministic init mimicking nn.Linear's uniform(-1/sqrt(in), 1/sqrt(in))."""
    kw, kb = jax.random.split(key)
    bound = 1.0 / jnp.sqrt(jnp.float32(in_f))
    w = jax.random.uniform(kw, (out_f, in_f), jnp.float32, -bound, bound)
    b = jax.random.uniform(kb, (out_f,), jnp.float32, -bound, bound)
    return w, b


if __name__ == "__main__":
    key = jax.random.PRNGKey(0)
    k_x, k_l1, k_l2, k_l3, k_x2, k_l4, k_l5 = jax.random.split(key, 7)

    # Small shapes consistent with the module: batch=8, n_features=32, n_classes=8.
    B, F, C = 8, 32, 8
    x = jax.random.normal(k_x, (B, F), jnp.float32)

    # mlp=True variant: Linear(F,F) -> ReLU -> Linear(F,C)
    w1, b1 = _init_linear(k_l1, F, F)
    w2, b2 = _init_linear(k_l2, C, F)
    prep_mlp = prepare_params((w1, b1, w2, b2), mlp=True)
    out_mlp = fine_tuner_forward(x, prep_mlp)

    # mlp=False variant: single Linear(F,C)
    w, b = _init_linear(k_l3, C, F)
    prep_lin = prepare_params((w, b), mlp=False)
    out_lin = fine_tuner_forward(x, prep_lin)

    # K-tiled path (reduction grid axis + f32 accumulator), forced via k_tile=128.
    B2, F2 = 16, 256
    x2 = jax.random.normal(k_x2, (B2, F2), jnp.float32)
    w1b, b1b = _init_linear(k_l4, F2, F2)
    w2b, b2b = _init_linear(k_l5, C, F2)
    prep_mlp_k = prepare_params((w1b, b1b, w2b, b2b), mlp=True, k_tile=128)
    out_mlp_k = fine_tuner_forward(x2, prep_mlp_k)
    prep_lin_k = prepare_params((w2b, b2b), mlp=False, k_tile=128)
    out_lin_k = fine_tuner_forward(x2, prep_lin_k)

    jax.block_until_ready((out_mlp, out_lin, out_mlp_k, out_lin_k))

    # References in plain JAX (PyTorch semantics: y = x @ W.T + b)
    ref_mlp = jnp.maximum(x @ w1.T + b1, 0.0) @ w2.T + b2
    ref_lin = x @ w.T + b
    ref_mlp_k = jnp.maximum(x2 @ w1b.T + b1b, 0.0) @ w2b.T + b2b
    ref_lin_k = x2 @ w2b.T + b2b

    assert out_mlp.shape == (B, C) and out_lin.shape == (B, C)
    assert out_mlp_k.shape == (B2, C) and out_lin_k.shape == (B2, C)
    assert jnp.allclose(out_mlp, ref_mlp, atol=1e-5, rtol=1e-5)
    assert jnp.allclose(out_lin, ref_lin, atol=1e-5, rtol=1e-5)
    assert jnp.allclose(out_mlp_k, ref_mlp_k, atol=1e-4, rtol=1e-4)
    assert jnp.allclose(out_lin_k, ref_lin_k, atol=1e-4, rtol=1e-4)

    print("KERNEL_OK")
</pallas_src>

<mosaic_0001>
module attributes {stable_mosaic.version = 11 : i64} {
  func.func @_mlp_kernel(%arg0: i32, %arg1: memref<8x32xf32, #tpu.memory_space<vmem>>, %arg2: memref<32x128xf32, #tpu.memory_space<vmem>>, %arg3: memref<1x128xf32, #tpu.memory_space<vmem>>, %arg4: memref<128x128xf32, #tpu.memory_space<vmem>>, %arg5: memref<1x128xf32, #tpu.memory_space<vmem>>, %arg6: memref<8x128xf32, #tpu.memory_space<vmem>>) attributes {dimension_semantics = [#tpu.dimension_semantics<parallel>], iteration_bounds = array<i64: 1>, scalar_prefetch = 0 : i64, scratch_operands = 0 : i64, tpu.core_type = #tpu.core_type<tc>, window_params = [{transform_indices = @transform_0, window_bounds = array<i64: 8, 32>}, {pipeline_mode = #tpu.pipeline_mode<synchronous>, transform_indices = @transform_1, window_bounds = array<i64: 32, 128>}, {pipeline_mode = #tpu.pipeline_mode<synchronous>, transform_indices = @transform_2, window_bounds = array<i64: 1, 128>}, {pipeline_mode = #tpu.pipeline_mode<synchronous>, transform_indices = @transform_3, window_bounds = array<i64: 128, 128>}, {pipeline_mode = #tpu.pipeline_mode<synchronous>, transform_indices = @transform_4, window_bounds = array<i64: 1, 128>}, {transform_indices = @transform_5, window_bounds = array<i64: 8, 128>}]} {
    %c0 = arith.constant 0 : index
    %c0_0 = arith.constant 0 : index
    %0 = vector.load %arg1[%c0, %c0_0] : memref<8x32xf32, #tpu.memory_space<vmem>>, vector<8x32xf32>
    %c0_1 = arith.constant 0 : index
    %c0_2 = arith.constant 0 : index
    %1 = vector.load %arg2[%c0_1, %c0_2] : memref<32x128xf32, #tpu.memory_space<vmem>>, vector<32x128xf32>
    %cst = arith.constant dense<0.000000e+00> : vector<8x128xf32>
    %2 = tpu.matmul %0, %1, %cst {dimension_numbers = #tpu.dot_dimension_numbers<[1], [0], [0], [1], [0, 0, 1, 1], [], []>} : vector<8x32xf32>, vector<32x128xf32>, vector<8x128xf32> -> vector<8x128xf32>
    %c0_3 = arith.constant 0 : index
    %c0_4 = arith.constant 0 : index
    %3 = vector.load %arg3[%c0_3, %c0_4] : memref<1x128xf32, #tpu.memory_space<vmem>>, vector<1x128xf32>
    %4 = vector.broadcast %3 : vector<1x128xf32> to vector<8x128xf32>
    %5 = arith.addf %2, %4 : vector<8x128xf32>
    %cst_5 = arith.constant 0.000000e+00 : f32
    %6 = vector.broadcast %cst_5 : f32 to vector<8x128xf32>
    %7 = arith.maximumf %5, %6 : vector<8x128xf32>
    %c0_6 = arith.constant 0 : index
    %c0_7 = arith.constant 0 : index
    %8 = vector.load %arg4[%c0_6, %c0_7] : memref<128x128xf32, #tpu.memory_space<vmem>>, vector<128x128xf32>
    %cst_8 = arith.constant dense<0.000000e+00> : vector<8x128xf32>
    %9 = tpu.matmul %7, %8, %cst_8 {dimension_numbers = #tpu.dot_dimension_numbers<[1], [0], [0], [1], [0, 0, 1, 1], [], []>} : vector<8x128xf32>, vector<128x128xf32>, vector<8x128xf32> -> vector<8x128xf32>
    %c0_9 = arith.constant 0 : index
    %c0_10 = arith.constant 0 : index
    %10 = vector.load %arg5[%c0_9, %c0_10] : memref<1x128xf32, #tpu.memory_space<vmem>>, vector<1x128xf32>
    %11 = vector.broadcast %10 : vector<1x128xf32> to vector<8x128xf32>
    %12 = arith.addf %9, %11 : vector<8x128xf32>
    %c0_11 = arith.constant 0 : index
    %c0_12 = arith.constant 0 : index
    %13 = vector.load %arg6[%c0_11, %c0_12] : memref<8x128xf32, #tpu.memory_space<vmem>>, vector<8x128xf32>
    tpu.vector_store %arg6[%c0_11, %c0_12], %12 {strides = array<i32>} : memref<8x128xf32, #tpu.memory_space<vmem>>, vector<8x128xf32>,
    return
  }
  func.func @transform_0(%arg0: i32) -> (i32, i32) {
    %c0_i32 = arith.constant 0 : i32
    %c0_i32_0 = arith.constant 0 : i32
    return %arg0, %c0_i32 : i32, i32
  }
  func.func @transform_1(%arg0: i32) -> (i32, i32) {
    %c0_i32 = arith.constant 0 : i32
    %c0_i32_0 = arith.constant 0 : i32
    %c0_i32_1 = arith.constant 0 : i32
    return %c0_i32, %c0_i32_0 : i32, i32
  }
  func.func @transform_2(%arg0: i32) -> (i32, i32) {
    %c0_i32 = arith.constant 0 : i32
    %c0_i32_0 = arith.constant 0 : i32
    %c0_i32_1 = arith.constant 0 : i32
    return %c0_i32, %c0_i32_0 : i32, i32
  }
  func.func @transform_3(%arg0: i32) -> (i32, i32) {
    %c0_i32 = arith.constant 0 : i32
    %c0_i32_0 = arith.constant 0 : i32
    %c0_i32_1 = arith.constant 0 : i32
    return %c0_i32, %c0_i32_0 : i32, i32
  }
  func.func @transform_4(%arg0: i32) -> (i32, i32) {
    %c0_i32 = arith.constant 0 : i32
    %c0_i32_0 = arith.constant 0 : i32
    %c0_i32_1 = arith.constant 0 : i32
    return %c0_i32, %c0_i32_0 : i32, i32
  }
  func.func @transform_5(%arg0: i32) -> (i32, i32) {
    %c0_i32 = arith.constant 0 : i32
    %c0_i32_0 = arith.constant 0 : i32
    return %arg0, %c0_i32 : i32, i32
  }
}

</mosaic_0001>

<bundles_post_ra>
// kernel: tpu_custom_call.1
= control target key start
LH: loop header
LB: loop body
LE: loop exit
PB: predicated region body
PF: predicated region fallthrough
CT: control target
= control target key end

     0   :  { %10 = vsyncpa [#allocation3], 0  ;;  %s500_s0 = inlined_call_operand.hbm [shape: f32[8,32], index: 0, kind: input, shape index: {}]   ;;  %s501_s1 = inlined_call_operand.hbm [shape: f32[32,128], index: 1, kind: input, shape index: {}]   ;;  %s502_s2 = inlined_call_operand.vmem [shape: f32[1,128], index: 2, kind: input, shape index: {}]   ;;  %s503_s3 = inlined_call_operand.hbm [shape: f32[128,128], index: 3, kind: input, shape index: {}]   ;;  %s504_s4 = inlined_call_operand.vmem [shape: f32[1,128], index: 4, kind: input, shape index: {}]   ;;  %s505_s5 = inlined_call_operand.hbm [shape: f32[8,128], index: 5, kind: output, shape index: {}]  }
   0x1   :  { %11 = vsyncpa [#allocation6], 0 }
   0x2   :  { %12 = vsyncpa [#allocation4], 0  ;;  %s422_s18 = smov [#allocation5]  }
   0x3   :  { %s28_s19 = sshll.u32 %s422_s18, 4  ;;  %s29_s19 = int_to_ptr.vmem [resolvable:$true] %s28_s19 }
   0x4   :  { %s344_s20 = scalar_lea.vmem %s29_s19, 512  ;;  %p349_p1 = scmp.lt.s32.totalorder %s29_s19, %s29_s19 }
   0x5   :  { %p345_p0 = scmp.ne.s32.totalorder %s29_s19, %s344_s20  ;;  %p350_p2 = scmp.lt.s32.totalorder %s344_s20, %s344_s20 }
   0x7   :  { %p351_p3 = por %p350_p2, %p349_p1 }
   0x9   :  { %p352_p4 = pnand %p351_p3, %p345_p0 }
   0xb   :  { %355 = shalt.err (!%p352_p4)
}
   0xc   :  { %s423_s21 = smov 128   ;;  %s424_s22 = smov 8  }
   0xd   :  { %34 = dma.hbm_to_vmem [thread:$0]  %s501_s1, 512, %s29_s19, [#allocation6], %s423_s21, %s423_s21, %s424_s22  }
   0xe   :  { %s425_s25 = smov [#allocation2]   ;;  %s426_s27 = smov [#allocation7]  }
   0xf   :  { %s19_s26 = sshll.u32 %s425_s25, 4  ;;  %s42_s28 = sshll.u32 %s426_s27, 4  ;;  %s20_s26 = int_to_ptr.vmem [resolvable:$true] %s19_s26  ;;  %s43_s28 = int_to_ptr.vmem [resolvable:$true] %s42_s28 }
  0x10   :  { %s364_s29 = scalar_lea.vmem %s20_s26, 128  ;;  %p369_p6 = scmp.lt.s32.totalorder %s20_s26, %s20_s26 }
  0x11   :  { %p365_p5 = scmp.ne.s32.totalorder %s20_s26, %s364_s29  ;;  %p370_p7 = scmp.lt.s32.totalorder %s364_s29, %s364_s29 }
  0x13   :  { %p371_p8 = por %p370_p7, %p369_p6 }
  0x15   :  { %p372_p9 = pnand %p371_p8, %p365_p5 }
  0x17   :  { %375 = shalt.err (!%p372_p9)
}
  0x18   :  { %22 = dma.hbm_to_vmem [thread:$0]  %s500_s0, 128, %s20_s26, [#allocation3]  }
  0x19   :  { %s384_s7 = scalar_lea.vmem %s43_s28, 2048  ;;  %p389_p11 = scmp.lt.s32.totalorder %s43_s28, %s43_s28 }
  0x1a   :  { %p385_p10 = scmp.ne.s32.totalorder %s43_s28, %s384_s7  ;;  %p390_p12 = scmp.lt.s32.totalorder %s384_s7, %s384_s7 }
  0x1c   :  { %p391_p13 = por %p390_p12, %p389_p11 }
  0x1e   :  { %p392_p0 = pnand %p391_p13, %p385_p10 }
  0x20   :  { %395 = shalt.err (!%p392_p0)
}
  0x21   :  { %48 = dma.hbm_to_vmem [thread:$0]  %s503_s3, 2048, %s43_s28, [#allocation6], %s423_s21, %s423_s21, %s424_s22  }
  0x22   :  { %416 = dma.done.wait [#allocation3], 128  }
  0x23   :  { %417 = vsyncadd [#allocation3], 4294967168 }
  0x24   :  { %418 = dma.done.wait [#allocation6], 2560  }
  0x25   :  { %419 = vsyncadd [#allocation6], 4294964736  ;;  %v427_v0 = vmov 0.0   ;;  %vm428_vm0 = vmmov 0   ;;  %v64_v1 = vld [vmem:[#allocation5 + $0x18] sm:$0xff]  ;;  %v63_v2 = vld [vmem:[#allocation5 + $0x10] sm:$0xff] }
  0x26   :  { %282 = vmatprep.subr.mxu0 %v427_v0  ;;  %290 = vmatprep.mubr.msk.f32.mxu0 %vm428_vm0, %v427_v0  ;;  %v162_v3 = vld [vmem:[#allocation7 + $0x78] sm:$0xff]  ;;  %v62_v4 = vld [vmem:[#allocation5 + $0x8] sm:$0xff]  ;;  %v161_v5 = vld [vmem:[#allocation7 + $0x70] sm:$0xff]  ;;  %vm72_vm1 = vcmask 261120   ;;  %s429_s11 = smov [#allocation8]  }
  0x27   :  { %293 = vmatprep.subr.mxu1 %v427_v0  ;;  %325 = vmatprep.mubr.msk.f32.mxu1 %vm428_vm0, %v427_v0  ;;  %v160_v6 = vld [vmem:[#allocation7 + $0x68] sm:$0xff]  ;;  %v61_v7 = vld [vmem:[#allocation5] sm:$0xff]  ;;  %v60_v8 = vld [vmem:[#allocation2] sm:$0xff]  ;;  %s247_s12 = sshll.u32 %s429_s11, 4  ;;  %s248_s12 = int_to_ptr.vmem [resolvable:$true] %s247_s12 }
  0x28   :  { %283 = vmatpush3.msra.mxu0 %v64_v1  ;;  %294 = vmatpush3.msra.mxu1 %v162_v3  ;;  %v159_v9 = vld [vmem:[#allocation7 + $0x60] sm:$0xff]  ;;  %v158_v10 = vld [vmem:[#allocation7 + $0x58] sm:$0xff]  ;;  %v157_v11 = vld [vmem:[#allocation7 + $0x50] sm:$0xff]  ;;  %s396_s13 = scalar_lea.vmem %s248_s12, 128  ;;  %p401_p2 = scmp.lt.s32.totalorder %s248_s12, %s248_s12 }
  0x29   :  { %284 = vmatprep.subr.mxu0 %v427_v0  ;;  %295 = vmatprep.subr.mxu1 %v427_v0  ;;  %v156_v12 = vld [vmem:[#allocation7 + $0x48] sm:$0xff]  ;;  %v155_v13 = vld [vmem:[#allocation7 + $0x40] sm:$0xff]  ;;  %v154_v14 = vld [vmem:[#allocation7 + $0x38] sm:$0xff]  ;;  %p397_p1 = scmp.ne.s32.totalorder %s248_s12, %s396_s13  ;;  %p402_p3 = scmp.lt.s32.totalorder %s396_s13, %s396_s13 }
  0x2a   :  { %285 = vmatpush3.msra.mxu0 %v63_v2  ;;  %296 = vmatpush3.msra.mxu1 %v161_v5  ;;  %v153_v15 = vld [vmem:[#allocation7 + $0x30] sm:$0xff]  ;;  %v152_v16 = vld [vmem:[#allocation7 + $0x28] sm:$0xff]  ;;  %v151_v17 = vld [vmem:[#allocation7 + $0x20] sm:$0xff] }
  0x2b   :  { %286 = vmatprep.subr.mxu0 %v427_v0  ;;  %297 = vmatprep.subr.mxu1 %v427_v0  ;;  %v150_v18 = vld [vmem:[#allocation7 + $0x18] sm:$0xff]  ;;  %v149_v19 = vld [vmem:[#allocation7 + $0x10] sm:$0xff]  ;;  %v148_v20 = vld [vmem:[#allocation7 + $0x8] sm:$0xff]  ;;  %p403_p4 = por %p402_p3, %p401_p2 }
  0x2c   :  { %287 = vmatpush3.msra.mxu0 %v62_v4  ;;  %298 = vmatpush3.msra.mxu1 %v160_v6  ;;  %v147_v21 = vld [vmem:[#allocation7] sm:$0xff]  ;;  %v257_v22 = vld [vmem:[%s502_s2] ss:$0 sm:$0xff] }
  0x2d   :  { %288 = vmatprep.subr.mxu0 %v427_v0  ;;  %299 = vmatprep.subr.mxu1 %v427_v0  ;;  %v259_v27 = vld [vmem:[%s504_s4] ss:$0 sm:$0xff]  ;;  %p404_p5 = pnand %p403_p4, %p397_p1 }
  0x2e   :  { %289 = vmatpush3.msra.mxu0 %v61_v7  ;;  %300 = vmatpush3.msra.mxu1 %v159_v9 }
  0x2f   :  { %291 = vmatmul.mubr.msk.f32.vlgmr.msra.gmra.mxu0 %vm72_vm1, %v60_v8  ;;  %301 = vmatprep.subr.mxu1 %v427_v0 }
  0x30   :  { %302 = vmatpush3.msra.mxu1 %v158_v10 }
  0x31   :  { %303 = vmatprep.subr.mxu1 %v427_v0 }
  0x32   :  { %304 = vmatpush3.msra.mxu1 %v157_v11 }
  0x33   :  { %305 = vmatprep.subr.mxu1 %v427_v0 }
  0x34   :  { %306 = vmatpush3.msra.mxu1 %v156_v12 }
  0x35   :  { %307 = vmatprep.subr.mxu1 %v427_v0 }
  0x36   :  { %308 = vmatpush3.msra.mxu1 %v155_v13 }
  0x37   :  { %309 = vmatprep.subr.mxu1 %v427_v0 }
  0x38   :  { %310 = vmatpush3.msra.mxu1 %v154_v14 }
  0x39   :  { %311 = vmatprep.subr.mxu1 %v427_v0 }
  0x3a   :  { %312 = vmatpush3.msra.mxu1 %v153_v15 }
  0x3b   :  { %313 = vmatprep.subr.mxu1 %v427_v0 }
  0x3c   :  { %314 = vmatpush3.msra.mxu1 %v152_v16 }
  0x3d   :  { %315 = vmatprep.subr.mxu1 %v427_v0 }
  0x3e   :  { %316 = vmatpush3.msra.mxu1 %v151_v17 }
  0x3f   :  { %317 = vmatprep.subr.mxu1 %v427_v0 }
  0x40   :  { %318 = vmatpush3.msra.mxu1 %v150_v18 }
  0x41   :  { %319 = vmatprep.subr.mxu1 %v427_v0 }
  0x42   :  { %320 = vmatpush3.msra.mxu1 %v149_v19 }
  0x43   :  { %321 = vmatprep.subr.mxu1 %v427_v0 }
  0x44   :  { %322 = vmatpush3.msra.mxu1 %v148_v20 }
  0x45   :  { %323 = vmatprep.subr.mxu1 %v427_v0 }
  0x46   :  { %324 = vmatpush3.msra.mxu1 %v147_v21 }
  0xef   :  { %v142_v23 = vpop.f32.mrf.mxu0 }
  0xf0   :  { %v143_v24 = vadd.f32 %v257_v22, %v142_v23 }
  0xf1   :  { %v292_v25 = vpop.f32.mrf.mxu0 }
  0xf2   :  { %v146_v26 = vmax.f32 %v143_v24, 0.0 }
  0xf4   :  { %326 = vmatmul.mubr.f32.vlgmr.msra.gmra.mxu1 %v146_v26 }
 0x1b4   :  { %v236_v28 = vpop.f32.mrf.mxu1 }
 0x1b5   :  { %v237_v29 = vadd.f32 %v259_v27, %v236_v28 }
 0x1b6   :  { %v327_v30 = vpop.f32.mrf.mxu1 }
 0x1b7   :  { %240 = vst [vmem:[#allocation8] sm:$0xff] %v237_v29 }
 0x1b8   :  { %407 = shalt.err (!%p404_p5)
}
 0x1b9   :  { %250 = dma.vmem_to_hbm [thread:$0]  %s248_s12, 128, %s505_s5, [#allocation4]  }
 0x1ba   :  { %420 = dma.done.wait [#allocation4], 128  }
 0x1bb   :  { %421 = vsyncadd [#allocation4], 4294967168 }
 0x1bc   :  { %254 = vsyncpa [#allocation3], 1 }
 0x1bd   :  { %255 = vsyncpa [#allocation6], 1 }
 0x1be   :  { %256 = vsyncpa [#allocation4], 1 }

</bundles_post_ra>
